<compile_context>
chip_gen: v7x
topology: tpu7x:2x2x1
jax: 0.10.0
libtpu: 0.0.40
codegen_flags: <defaults>
</compile_context>

<pallas_src>
import functools

import jax
import jax.numpy as jnp
from jax.experimental import pallas as pl
from jax.experimental.pallas import tpu as pltpu


def _qrdqn_mlp_kernel(x_ref, w1_ref, b1_ref, w2_ref, b2_ref, w3_ref, b3_ref, o_ref):
    """Whole 3-layer tanh MLP for one batch tile.

    Layer 1 runs in f32 (x and W1 are f32).  Layers 2/3 run in the weights' dtype
    (f32 or bf16) on the MXU with f32 accumulation; bias adds and tanh stay f32.
    """
    x = x_ref[...]
    h1 = jnp.tanh(
        jnp.dot(x, w1_ref[...], preferred_element_type=jnp.float32) + b1_ref[...]
    )
    h2 = jnp.tanh(
        jnp.dot(h1.astype(w2_ref.dtype), w2_ref[...],
                preferred_element_type=jnp.float32) + b2_ref[...]
    )
    out = jnp.dot(h2.astype(w3_ref.dtype), w3_ref[...],
                  preferred_element_type=jnp.float32) + b3_ref[...]
    o_ref[...] = out.astype(o_ref.dtype)


def _round_up(x, m):
    return ((x + m - 1) // m) * m


def _choose_block_b(batch, max_block_b=1024):
    """Pick a batch tile that keeps padding waste small and, when the batch allows
    it, leaves >= 2 grid steps so the parallel axis can shard across v7x's 2 TCs."""
    b8 = _round_up(max(batch, 1), 8)  # sublane granularity for f32
    candidates = [c for c in (1024, 512, 256, 128, 64, 32, 16, 8) if c <= max_block_b]
    if not candidates:
        candidates = [8]
    for c in candidates:
        waste = _round_up(b8, c) - b8
        if waste > max(8, b8 // 8):
            continue  # too much dead work from batch padding
        if b8 < 2 * c and c != candidates[-1]:
            continue  # prefer >= 2 grid steps (megacore) when possible
        return c
    return candidates[-1]


def prepare_params(w1, b1, w2, b2, w3, b3, *, use_bf16=True):
    """One-time parameter prep (do NOT call per forward).

    * pads the hidden dim H and the final width A*Q up to multiples of 128 so every
      matmul operand / activation / store is lane-dense (extra rows/cols are zero,
      so semantics are unchanged),
    * optionally casts W2/W3 to bf16 for the MXU fast path (W1 and all biases stay
      f32; layer 1 is kept in full precision).
    """
    D, H = w1.shape
    N = w3.shape[1]
    H_pad = max(128, _round_up(H, 128))
    N_pad = max(128, _round_up(N, 128))

    w1p = jnp.pad(w1, ((0, 0), (0, H_pad - H)))
    b1p = jnp.pad(b1.reshape(1, H), ((0, 0), (0, H_pad - H)))
    w2p = jnp.pad(w2, ((0, H_pad - H), (0, H_pad - H)))
    b2p = jnp.pad(b2.reshape(1, H), ((0, 0), (0, H_pad - H)))
    w3p = jnp.pad(w3, ((0, H_pad - H), (0, N_pad - N)))
    b3p = jnp.pad(b3.reshape(1, N), ((0, 0), (0, N_pad - N)))

    if use_bf16:
        w2p = w2p.astype(jnp.bfloat16)
        w3p = w3p.astype(jnp.bfloat16)

    return (w1p, b1p, w2p, b2p, w3p, b3p)


@functools.partial(
    jax.jit, static_argnames=("num_actions", "num_quantiles", "max_block_b")
)
def qrdqn_forward(x, params, *, num_actions, num_quantiles, max_block_b=1024):
    """Forward pass. `params` must come from prepare_params()."""
    w1p, b1p, w2p, b2p, w3p, b3p = params
    B, D = x.shape
    H_pad = w1p.shape[1]
    N_pad = w3p.shape[1]
    N = num_actions * num_quantiles
    assert w1p.shape[0] == D
    assert N <= N_pad

    # ---- batch tiling (tight zero-pad; >=2 grid steps when B allows it) ----
    block_b = _choose_block_b(B, max_block_b)
    B_pad = _round_up(B, block_b)
    xp = jnp.pad(x, ((0, B_pad - B), (0, 0))) if B_pad != B else x
    grid = (B_pad // block_b,)

    # bf16 fast path -> bf16 output (halves the dominant HBM store stream);
    # exact f32 path -> f32 output.
    use_bf16 = (w3p.dtype == jnp.bfloat16)
    out_dtype = jnp.bfloat16 if use_bf16 else jnp.float32
    out_itemsize = 2 if use_bf16 else 4

    # x / out tiled along batch; weights & biases resident (constant block index,
    # so Pallas does not re-DMA them across grid steps).
    in_specs = [
        pl.BlockSpec((block_b, D), lambda i: (i, 0)),       # x tile (f32)
        pl.BlockSpec((D, H_pad), lambda i: (0, 0)),         # W1 (f32)
        pl.BlockSpec((1, H_pad), lambda i: (0, 0)),         # b1
        pl.BlockSpec((H_pad, H_pad), lambda i: (0, 0)),     # W2
        pl.BlockSpec((1, H_pad), lambda i: (0, 0)),         # b2
        pl.BlockSpec((H_pad, N_pad), lambda i: (0, 0)),     # W3 (lane-padded)
        pl.BlockSpec((1, N_pad), lambda i: (0, 0)),         # b3 (lane-padded)
    ]
    out_spec = pl.BlockSpec((block_b, N_pad), lambda i: (i, 0))

    weight_bytes = sum(int(a.size) * a.dtype.itemsize
                       for a in (w1p, b1p, w2p, b2p, w3p, b3p))
    cost = pl.CostEstimate(
        flops=2 * B_pad * (D * H_pad + H_pad * H_pad + H_pad * N_pad),
        transcendentals=2 * B_pad * H_pad,
        bytes_accessed=(B_pad * D * 4                 # x (f32)
                        + weight_bytes                # weights + biases
                        + B_pad * N_pad * out_itemsize),  # output
    )

    # Only raise the scoped VMEM limit when a large-H config actually needs it.
    vmem_needed = (2 * weight_bytes                       # double-buffered weights
                   + 2 * block_b * D * 4                  # x tiles
                   + 2 * block_b * N_pad * out_itemsize   # out tiles
                   + (2 << 20))                           # headroom
    vmem_limit = None
    if vmem_needed > (12 << 20):
        vmem_limit = min(int(vmem_needed * 5 // 4), 48 << 20)

    out = pl.pallas_call(
        _qrdqn_mlp_kernel,
        out_shape=jax.ShapeDtypeStruct((B_pad, N_pad), out_dtype),
        grid_spec=pltpu.PrefetchScalarGridSpec(
            num_scalar_prefetch=0,
            grid=grid,
            in_specs=in_specs,
            out_specs=out_spec,
        ),
        compiler_params=pltpu.CompilerParams(
            dimension_semantics=("parallel",),
            vmem_limit_bytes=vmem_limit,
        ),
        cost_estimate=cost,
    )(xp, w1p, b1p, w2p, b2p, w3p, b3p)

    return out[:B, :N].reshape(B, num_actions, num_quantiles)


def init_params(key, observation_dim, num_actions, num_quantiles, hidden_size):
    """Deterministic PyTorch-Linear-style init: U(-1/sqrt(fan_in), 1/sqrt(fan_in))."""
    ks = jax.random.split(key, 6)

    def lin(kw, kb, fan_in, fan_out):
        bound = float(fan_in) ** -0.5
        w = jax.random.uniform(kw, (fan_in, fan_out), jnp.float32, -bound, bound)
        b = jax.random.uniform(kb, (1, fan_out), jnp.float32, -bound, bound)
        return w, b

    w1, b1 = lin(ks[0], ks[1], observation_dim, hidden_size)
    w2, b2 = lin(ks[2], ks[3], hidden_size, hidden_size)
    w3, b3 = lin(ks[4], ks[5], hidden_size, num_actions * num_quantiles)
    return w1, b1, w2, b2, w3, b3


def qrdqn_forward_ref(x, w1, b1, w2, b2, w3, b3, *, num_actions, num_quantiles):
    h1 = jnp.tanh(x @ w1 + b1)
    h2 = jnp.tanh(h1 @ w2 + b2)
    q = h2 @ w3 + b3
    return q.reshape(-1, num_actions, num_quantiles)


# TODO(synk): the optimizer (Adam) and the .predict() argmax helper are training /
# host-side utilities, not part of the forward pass, so they are not ported.

if __name__ == "__main__":
    observation_dim = 32
    hidden_size = 64
    num_actions = 4
    num_quantiles = 10
    batch = 8

    key = jax.random.PRNGKey(0)
    kx, kp = jax.random.split(key)

    x = jax.random.normal(kx, (batch, observation_dim), dtype=jnp.float32)
    raw = init_params(kp, observation_dim, num_actions, num_quantiles, hidden_size)

    ref = qrdqn_forward_ref(x, *raw, num_actions=num_actions,
                            num_quantiles=num_quantiles)

    # Exact-precision path (all-f32 MXU operands) — matches the PyTorch forward tightly.
    params_f32 = prepare_params(*raw, use_bf16=False)
    out_f32 = qrdqn_forward(x, params_f32, num_actions=num_actions,
                            num_quantiles=num_quantiles)
    out_f32 = jax.block_until_ready(out_f32)
    assert out_f32.shape == (batch, num_actions, num_quantiles), out_f32.shape
    assert out_f32.dtype == jnp.float32
    assert jnp.allclose(out_f32, ref, atol=1e-5, rtol=1e-5), "f32 mismatch vs reference"

    # Fast path: layer 1 f32, layers 2/3 with bf16 operands + f32 accumulation,
    # bf16 output stream.  Looser tolerance expected.
    params_bf16 = prepare_params(*raw, use_bf16=True)
    out_bf16 = qrdqn_forward(x, params_bf16, num_actions=num_actions,
                             num_quantiles=num_quantiles)
    out_bf16 = jax.block_until_ready(out_bf16)
    assert out_bf16.shape == (batch, num_actions, num_quantiles), out_bf16.shape
    assert out_bf16.dtype == jnp.bfloat16
    assert jnp.allclose(out_bf16.astype(jnp.float32), ref, atol=5e-2, rtol=5e-2), \
        "bf16 mismatch vs reference"

    print("KERNEL_OK")
</pallas_src>

<mosaic_0001>
module attributes {stable_mosaic.version = 11 : i64} {
  func.func @_qrdqn_mlp_kernel(%arg0: i32, %arg1: memref<8x32xf32, #tpu.memory_space<vmem>>, %arg2: memref<32x128xf32, #tpu.memory_space<vmem>>, %arg3: memref<1x128xf32, #tpu.memory_space<vmem>>, %arg4: memref<128x128xf32, #tpu.memory_space<vmem>>, %arg5: memref<1x128xf32, #tpu.memory_space<vmem>>, %arg6: memref<128x128xf32, #tpu.memory_space<vmem>>, %arg7: memref<1x128xf32, #tpu.memory_space<vmem>>, %arg8: memref<8x128xf32, #tpu.memory_space<vmem>>) attributes {dimension_semantics = [#tpu.dimension_semantics<parallel>], iteration_bounds = array<i64: 1>, scalar_prefetch = 0 : i64, scratch_operands = 0 : i64, tpu.core_type = #tpu.core_type<tc>, window_params = [{transform_indices = @transform_0, window_bounds = array<i64: 8, 32>}, {pipeline_mode = #tpu.pipeline_mode<synchronous>, transform_indices = @transform_1, window_bounds = array<i64: 32, 128>}, {pipeline_mode = #tpu.pipeline_mode<synchronous>, transform_indices = @transform_2, window_bounds = array<i64: 1, 128>}, {pipeline_mode = #tpu.pipeline_mode<synchronous>, transform_indices = @transform_3, window_bounds = array<i64: 128, 128>}, {pipeline_mode = #tpu.pipeline_mode<synchronous>, transform_indices = @transform_4, window_bounds = array<i64: 1, 128>}, {pipeline_mode = #tpu.pipeline_mode<synchronous>, transform_indices = @transform_5, window_bounds = array<i64: 128, 128>}, {pipeline_mode = #tpu.pipeline_mode<synchronous>, transform_indices = @transform_6, window_bounds = array<i64: 1, 128>}, {transform_indices = @transform_7, window_bounds = array<i64: 8, 128>}]} {
    %c0 = arith.constant 0 : index
    %c0_0 = arith.constant 0 : index
    %0 = vector.load %arg1[%c0, %c0_0] : memref<8x32xf32, #tpu.memory_space<vmem>>, vector<8x32xf32>
    %c0_1 = arith.constant 0 : index
    %c0_2 = arith.constant 0 : index
    %1 = vector.load %arg2[%c0_1, %c0_2] : memref<32x128xf32, #tpu.memory_space<vmem>>, vector<32x128xf32>
    %cst = arith.constant dense<0.000000e+00> : vector<8x128xf32>
    %2 = tpu.matmul %0, %1, %cst {dimension_numbers = #tpu.dot_dimension_numbers<[1], [0], [0], [1], [0, 0, 1, 1], [], []>} : vector<8x32xf32>, vector<32x128xf32>, vector<8x128xf32> -> vector<8x128xf32>
    %c0_3 = arith.constant 0 : index
    %c0_4 = arith.constant 0 : index
    %3 = vector.load %arg3[%c0_3, %c0_4] : memref<1x128xf32, #tpu.memory_space<vmem>>, vector<1x128xf32>
    %4 = vector.broadcast %3 : vector<1x128xf32> to vector<8x128xf32>
    %5 = arith.addf %2, %4 : vector<8x128xf32>
    %6 = math.tanh %5 : vector<8x128xf32>
    %c0_5 = arith.constant 0 : index
    %c0_6 = arith.constant 0 : index
    %7 = vector.load %arg4[%c0_5, %c0_6] : memref<128x128xf32, #tpu.memory_space<vmem>>, vector<128x128xf32>
    %cst_7 = arith.constant dense<0.000000e+00> : vector<8x128xf32>
    %8 = tpu.matmul %6, %7, %cst_7 {dimension_numbers = #tpu.dot_dimension_numbers<[1], [0], [0], [1], [0, 0, 1, 1], [], []>} : vector<8x128xf32>, vector<128x128xf32>, vector<8x128xf32> -> vector<8x128xf32>
    %c0_8 = arith.constant 0 : index
    %c0_9 = arith.constant 0 : index
    %9 = vector.load %arg5[%c0_8, %c0_9] : memref<1x128xf32, #tpu.memory_space<vmem>>, vector<1x128xf32>
    %10 = vector.broadcast %9 : vector<1x128xf32> to vector<8x128xf32>
    %11 = arith.addf %8, %10 : vector<8x128xf32>
    %12 = math.tanh %11 : vector<8x128xf32>
    %c0_10 = arith.constant 0 : index
    %c0_11 = arith.constant 0 : index
    %13 = vector.load %arg6[%c0_10, %c0_11] : memref<128x128xf32, #tpu.memory_space<vmem>>, vector<128x128xf32>
    %cst_12 = arith.constant dense<0.000000e+00> : vector<8x128xf32>
    %14 = tpu.matmul %12, %13, %cst_12 {dimension_numbers = #tpu.dot_dimension_numbers<[1], [0], [0], [1], [0, 0, 1, 1], [], []>} : vector<8x128xf32>, vector<128x128xf32>, vector<8x128xf32> -> vector<8x128xf32>
    %c0_13 = arith.constant 0 : index
    %c0_14 = arith.constant 0 : index
    %15 = vector.load %arg7[%c0_13, %c0_14] : memref<1x128xf32, #tpu.memory_space<vmem>>, vector<1x128xf32>
    %16 = vector.broadcast %15 : vector<1x128xf32> to vector<8x128xf32>
    %17 = arith.addf %14, %16 : vector<8x128xf32>
    %c0_15 = arith.constant 0 : index
    %c0_16 = arith.constant 0 : index
    %18 = vector.load %arg8[%c0_15, %c0_16] : memref<8x128xf32, #tpu.memory_space<vmem>>, vector<8x128xf32>
    tpu.vector_store %arg8[%c0_15, %c0_16], %17 {strides = array<i32>} : memref<8x128xf32, #tpu.memory_space<vmem>>, vector<8x128xf32>,
    return
  }
  func.func @transform_0(%arg0: i32) -> (i32, i32) {
    %c0_i32 = arith.constant 0 : i32
    %c0_i32_0 = arith.constant 0 : i32
    return %arg0, %c0_i32 : i32, i32
  }
  func.func @transform_1(%arg0: i32) -> (i32, i32) {
    %c0_i32 = arith.constant 0 : i32
    %c0_i32_0 = arith.constant 0 : i32
    %c0_i32_1 = arith.constant 0 : i32
    return %c0_i32, %c0_i32_0 : i32, i32
  }
  func.func @transform_2(%arg0: i32) -> (i32, i32) {
    %c0_i32 = arith.constant 0 : i32
    %c0_i32_0 = arith.constant 0 : i32
    %c0_i32_1 = arith.constant 0 : i32
    return %c0_i32, %c0_i32_0 : i32, i32
  }
  func.func @transform_3(%arg0: i32) -> (i32, i32) {
    %c0_i32 = arith.constant 0 : i32
    %c0_i32_0 = arith.constant 0 : i32
    %c0_i32_1 = arith.constant 0 : i32
    return %c0_i32, %c0_i32_0 : i32, i32
  }
  func.func @transform_4(%arg0: i32) -> (i32, i32) {
    %c0_i32 = arith.constant 0 : i32
    %c0_i32_0 = arith.constant 0 : i32
    %c0_i32_1 = arith.constant 0 : i32
    return %c0_i32, %c0_i32_0 : i32, i32
  }
  func.func @transform_5(%arg0: i32) -> (i32, i32) {
    %c0_i32 = arith.constant 0 : i32
    %c0_i32_0 = arith.constant 0 : i32
    %c0_i32_1 = arith.constant 0 : i32
    return %c0_i32, %c0_i32_0 : i32, i32
  }
  func.func @transform_6(%arg0: i32) -> (i32, i32) {
    %c0_i32 = arith.constant 0 : i32
    %c0_i32_0 = arith.constant 0 : i32
    %c0_i32_1 = arith.constant 0 : i32
    return %c0_i32, %c0_i32_0 : i32, i32
  }
  func.func @transform_7(%arg0: i32) -> (i32, i32) {
    %c0_i32 = arith.constant 0 : i32
    %c0_i32_0 = arith.constant 0 : i32
    return %arg0, %c0_i32 : i32, i32
  }
}

</mosaic_0001>

<bundles_post_ra>
// kernel: qrdqn_forward.1
= control target key start
LH: loop header
LB: loop body
LE: loop exit
PB: predicated region body
PF: predicated region fallthrough
CT: control target
= control target key end

     0   :  { %12 = vsyncpa [#allocation3], 0  ;;  %s785_s0 = inlined_call_operand.hbm [shape: f32[8,32], index: 0, kind: input, shape index: {}]   ;;  %s786_s1 = inlined_call_operand.hbm [shape: f32[32,128], index: 1, kind: input, shape index: {}]   ;;  %s787_s2 = inlined_call_operand.vmem [shape: f32[1,128], index: 2, kind: input, shape index: {}]   ;;  %s788_s3 = inlined_call_operand.hbm [shape: f32[128,128], index: 3, kind: input, shape index: {}]   ;;  %s789_s4 = inlined_call_operand.vmem [shape: f32[1,128], index: 4, kind: input, shape index: {}]   ;;  %s790_s5 = inlined_call_operand.hbm [shape: f32[128,128], index: 5, kind: input, shape index: {}]   ;;  %s791_s6 = inlined_call_operand.vmem [shape: f32[1,128], index: 6, kind: input, shape index: {}]   ;;  %s792_s7 = inlined_call_operand.vmem [shape: f32[8,128], index: 7, kind: output, shape index: {}]  }
   0x1   :  { %13 = vsyncpa [#allocation5], 0 }
   0x2   :  { %14 = vsyncpa [#allocation8], 0  ;;  %s646_s24 = smov [#allocation4]   ;;  %s552_s28 = scalar_lea.hbm %s786_s1, 512 }
   0x3   :  { %s30_s25 = sshll.u32 %s646_s24, 4  ;;  %p553_p0 = scmp.ne.s32.totalorder %s786_s1, %s552_s28  ;;  %s31_s25 = int_to_ptr.vmem [resolvable:$true] %s30_s25 }
   0x4   :  { %p556_p1 = scmp.lt.u32.totalorder %s552_s28, %s786_s1 }
   0x6   :  { %p558_p2 = pnand %p556_p1, %p553_p0 }
   0x8   :  { %561 = shalt.err (!%p558_p2)
}
   0x9   :  { %s562_s10 = scalar_lea.vmem %s31_s25, 512  ;;  %p567_p4 = scmp.lt.s32.totalorder %s31_s25, %s31_s25 }
   0xa   :  { %p563_p3 = scmp.ne.s32.totalorder %s31_s25, %s562_s10  ;;  %p568_p5 = scmp.lt.s32.totalorder %s562_s10, %s562_s10 }
   0xc   :  { %p569_p6 = por %p568_p5, %p567_p4 }
   0xe   :  { %p570_p7 = pnand %p569_p6, %p563_p3 }
  0x10   :  { %573 = shalt.err (!%p570_p7)
}
  0x11   :  { %s647_s11 = smov 128   ;;  %s648_s12 = smov 8  }
  0x12   :  { %36 = dma.hbm_to_vmem [thread:$0]  %s786_s1, 512, %s31_s25, [#allocation5], %s647_s11, %s647_s11, %s648_s12  }
  0x13   :  { %s649_s15 = smov [#allocation2]   ;;  %s650_s17 = smov [#allocation6]  }
  0x14   :  { %s21_s16 = sshll.u32 %s649_s15, 4  ;;  %s44_s18 = sshll.u32 %s650_s17, 4  ;;  %s22_s16 = int_to_ptr.vmem [resolvable:$true] %s21_s16  ;;  %s45_s18 = int_to_ptr.vmem [resolvable:$true] %s44_s18 }
  0x15   :  { %s574_s21 = scalar_lea.hbm %s785_s0, 128 }
  0x16   :  { %p575_p8 = scmp.ne.s32.totalorder %s785_s0, %s574_s21  ;;  %p578_p9 = scmp.lt.u32.totalorder %s574_s21, %s785_s0 }
  0x18   :  { %p580_p10 = pnand %p578_p9, %p575_p8 }
  0x1a   :  { %583 = shalt.err (!%p580_p10)
}
  0x1b   :  { %s584_s1 = scalar_lea.vmem %s22_s16, 128  ;;  %p589_p12 = scmp.lt.s32.totalorder %s22_s16, %s22_s16 }
  0x1c   :  { %p585_p11 = scmp.ne.s32.totalorder %s22_s16, %s584_s1  ;;  %p590_p13 = scmp.lt.s32.totalorder %s584_s1, %s584_s1 }
  0x1e   :  { %p591_p0 = por %p590_p13, %p589_p12 }
  0x20   :  { %p592_p1 = pnand %p591_p0, %p585_p11 }
  0x22   :  { %595 = shalt.err (!%p592_p1)
}
  0x23   :  { %24 = dma.hbm_to_vmem [thread:$0]  %s785_s0, 128, %s22_s16, [#allocation3]  }
  0x24   :  { %s596_s30 = scalar_lea.hbm %s788_s3, 2048 }
  0x25   :  { %p597_p2 = scmp.ne.s32.totalorder %s788_s3, %s596_s30  ;;  %p600_p3 = scmp.lt.u32.totalorder %s596_s30, %s788_s3 }
  0x27   :  { %p602_p4 = pnand %p600_p3, %p597_p2 }
  0x29   :  { %605 = shalt.err (!%p602_p4)
}
  0x2a   :  { %s606_s14 = scalar_lea.vmem %s45_s18, 2048  ;;  %p611_p6 = scmp.lt.s32.totalorder %s45_s18, %s45_s18 }
  0x2b   :  { %p607_p5 = scmp.ne.s32.totalorder %s45_s18, %s606_s14  ;;  %p612_p7 = scmp.lt.s32.totalorder %s606_s14, %s606_s14 }
  0x2d   :  { %p613_p8 = por %p612_p7, %p611_p6 }
  0x2f   :  { %p614_p9 = pnand %p613_p8, %p607_p5 }
  0x31   :  { %617 = shalt.err (!%p614_p9)
}
  0x32   :  { %50 = dma.hbm_to_vmem [thread:$0]  %s788_s3, 2048, %s45_s18, [#allocation5], %s647_s11, %s647_s11, %s648_s12  }
  0x33   :  { %s651_s16 = smov [#allocation7]   ;;  %s618_s21 = scalar_lea.hbm %s790_s5, 2048 }
  0x34   :  { %s58_s17 = sshll.u32 %s651_s16, 4  ;;  %p619_p10 = scmp.ne.s32.totalorder %s790_s5, %s618_s21  ;;  %s59_s17 = int_to_ptr.vmem [resolvable:$true] %s58_s17 }
  0x35   :  { %p622_p11 = scmp.lt.u32.totalorder %s618_s21, %s790_s5 }
  0x37   :  { %p624_p12 = pnand %p622_p11, %p619_p10 }
  0x39   :  { %627 = shalt.err (!%p624_p12)
}
  0x3a   :  { %s628_s1 = scalar_lea.vmem %s59_s17, 2048  ;;  %p633_p0 = scmp.lt.s32.totalorder %s59_s17, %s59_s17 }
  0x3b   :  { %p629_p13 = scmp.ne.s32.totalorder %s59_s17, %s628_s1  ;;  %p634_p1 = scmp.lt.s32.totalorder %s628_s1, %s628_s1 }
  0x3d   :  { %p635_p2 = por %p634_p1, %p633_p0 }
  0x3f   :  { %p636_p3 = pnand %p635_p2, %p629_p13 }
  0x41   :  { %639 = shalt.err (!%p636_p3)
}
  0x42   :  { %64 = dma.hbm_to_vmem [thread:$0]  %s790_s5, 2048, %s59_s17, [#allocation8], %s647_s11, %s647_s11, %s648_s12  }
  0x43   :  { %640 = dma.done.wait [#allocation3], 128  }
  0x44   :  { %641 = vsyncadd [#allocation3], 4294967168 }
  0x45   :  { %642 = dma.done.wait [#allocation5], 2560  }
  0x46   :  { %643 = vsyncadd [#allocation5], 4294964736 }
  0x47   :  { %644 = dma.done.wait [#allocation8], 2048  }
  0x48   :  { %645 = vsyncadd [#allocation8], 4294965248  ;;  %v652_v0 = vmov 0.0|0.0   ;;  %vm653_vm0 = vmmov 0   ;;  %v654_v1 = vmov 0.0   ;;  %v80_v2 = vld [vmem:[#allocation4] sm:$0xff] }
  0x49   :  { %485 = vmatprep.subr.bf16.mxu0 %v652_v0  ;;  %412 = vmatprep.mubr.msk.f32.mxu0 %vm653_vm0, %v654_v1  ;;  %v81_v3 = vld [vmem:[#allocation4 + $0x8] sm:$0xff]  ;;  %v82_v4 = vld [vmem:[#allocation4 + $0x10] sm:$0xff]  ;;  %v83_v6 = vld [vmem:[#allocation4 + $0x18] sm:$0xff]  ;;  %vm91_vm1 = vcmask 261120  }
  0x4a   :  { %491 = vmatprep.subr.bf16.mxu1 %v652_v0  ;;  %447 = vmatprep.mubr.msk.f32.mxu1 %vm653_vm0, %v654_v1  ;;  %v486_v5 = vpack.c.bf16 %v81_v3, %v80_v2  ;;  %v166_v7 = vld [vmem:[#allocation6] sm:$0xff]  ;;  %v167_v8 = vld [vmem:[#allocation6 + $0x8] sm:$0xff]  ;;  %v168_v9 = vld [vmem:[#allocation6 + $0x10] sm:$0xff]  ;;  %v489_v11 = vpack.c.bf16 %v83_v6, %v82_v4 }
  0x4b   :  { %v169_v10 = vld [vmem:[#allocation6 + $0x18] sm:$0xff]  ;;  %v492_v12 = vpack.c.bf16 %v167_v8, %v166_v7  ;;  %v170_v14 = vld [vmem:[#allocation6 + $0x20] sm:$0xff]  ;;  %v171_v15 = vld [vmem:[#allocation6 + $0x28] sm:$0xff] }
  0x4c   :  { %487 = vmatpush3.bf16.msra.mxu0 %v486_v5  ;;  %v495_v13 = vpack.c.bf16 %v169_v10, %v168_v9  ;;  %v79_v16 = vld [vmem:[#allocation2] sm:$0xff]  ;;  %v498_v17 = vpack.c.bf16 %v171_v15, %v170_v14  ;;  %v172_v18 = vld [vmem:[#allocation6 + $0x30] sm:$0xff]  ;;  %v174_v21 = vld [vmem:[#allocation6 + $0x40] sm:$0xff] }
  0x4d   :  { %488 = vmatprep.subr.bf16.mxu0 %v652_v0  ;;  %493 = vmatpush3.bf16.msra.mxu1 %v492_v12  ;;  %v173_v19 = vld [vmem:[#allocation6 + $0x38] sm:$0xff]  ;;  %v175_v22 = vld [vmem:[#allocation6 + $0x48] sm:$0xff]  ;;  %v176_v24 = vld [vmem:[#allocation6 + $0x50] sm:$0xff] }
  0x4e   :  { %494 = vmatprep.subr.bf16.mxu1 %v652_v0  ;;  %v501_v20 = vpack.c.bf16 %v173_v19, %v172_v18  ;;  %v504_v23 = vpack.c.bf16 %v175_v22, %v174_v21  ;;  %v177_v25 = vld [vmem:[#allocation6 + $0x58] sm:$0xff]  ;;  %v178_v27 = vld [vmem:[#allocation6 + $0x60] sm:$0xff]  ;;  %v179_v28 = vld [vmem:[#allocation6 + $0x68] sm:$0xff] }
  0x4f   :  { %v507_v26 = vpack.c.bf16 %v177_v25, %v176_v24  ;;  %v510_v29 = vpack.c.bf16 %v179_v28, %v178_v27  ;;  %v180_v30 = vld [vmem:[#allocation6 + $0x70] sm:$0xff]  ;;  %v181_v31 = vld [vmem:[#allocation6 + $0x78] sm:$0xff]  ;;  %v260_v33 = vld [vmem:[#allocation7] sm:$0xff] }
  0x50   :  { %490 = vmatpush3.bf16.msra.mxu0 %v489_v11  ;;  %v513_v32 = vpack.c.bf16 %v181_v31, %v180_v30  ;;  %v261_v34 = vld [vmem:[#allocation7 + $0x8] sm:$0xff]  ;;  %v262_v35 = vld [vmem:[#allocation7 + $0x10] sm:$0xff]  ;;  %v263_v37 = vld [vmem:[#allocation7 + $0x18] sm:$0xff] }
  0x51   :  { %515 = vmatprep.subr.bf16.mxu0 %v652_v0  ;;  %496 = vmatpush3.bf16.msra.mxu1 %v495_v13  ;;  %v516_v36 = vpack.c.bf16 %v261_v34, %v260_v33  ;;  %v519_v38 = vpack.c.bf16 %v263_v37, %v262_v35  ;;  %v264_v39 = vld [vmem:[#allocation7 + $0x20] sm:$0xff]  ;;  %v265_v40 = vld [vmem:[#allocation7 + $0x28] sm:$0xff]  ;;  %v266_v42 = vld [vmem:[#allocation7 + $0x30] sm:$0xff] }
  0x52   :  { %497 = vmatprep.subr.bf16.mxu1 %v652_v0  ;;  %v522_v41 = vpack.c.bf16 %v265_v40, %v264_v39  ;;  %v267_v43 = vld [vmem:[#allocation7 + $0x38] sm:$0xff]  ;;  %v268_v45 = vld [vmem:[#allocation7 + $0x40] sm:$0xff]  ;;  %v269_v46 = vld [vmem:[#allocation7 + $0x48] sm:$0xff] }
  0x53   :  { %413 = vmatmul.mubr.msk.f32.vlgmr.msra.gmra.mrb[0].mxu0 %vm91_vm1, %v79_v16  ;;  %v525_v44 = vpack.c.bf16 %v267_v43, %v266_v42  ;;  %v528_v47 = vpack.c.bf16 %v269_v46, %v268_v45  ;;  %v361_v48 = vld [vmem:[%s787_s2] ss:$0 sm:$0xff]  ;;  %v270_v53 = vld [vmem:[#allocation7 + $0x50] sm:$0xff]  ;;  %v272_v56 = vld [vmem:[#allocation7 + $0x60] sm:$0xff] }
  0x54   :  { %482 = vmatprep.mubr.msk.f32.mxu0 %vm653_vm0, %v654_v1  ;;  %517 = vmatpush3.bf16.msra.mxu0 %v516_v36  ;;  %v271_v54 = vld [vmem:[#allocation7 + $0x58] sm:$0xff]  ;;  %v273_v57 = vld [vmem:[#allocation7 + $0x68] sm:$0xff]  ;;  %v274_v59 = vld [vmem:[#allocation7 + $0x70] sm:$0xff] }
  0x55   :  { %499 = vmatpush3.bf16.msra.mxu1 %v498_v17  ;;  %518 = vmatprep.subr.bf16.mxu0 %v652_v0  ;;  %v531_v55 = vpack.c.bf16 %v271_v54, %v270_v53  ;;  %v534_v58 = vpack.c.bf16 %v273_v57, %v272_v56  ;;  %v275_v60 = vld [vmem:[#allocation7 + $0x78] sm:$0xff] }
  0x56   :  { %500 = vmatprep.subr.bf16.mxu1 %v652_v0  ;;  %v537_v61 = vpack.c.bf16 %v275_v60, %v274_v59  ;;  %v363_v62 = vld [vmem:[%s789_s4] ss:$0 sm:$0xff] }
  0x57   :  { %v364_v4 = vld [vmem:[%s791_s6] ss:$0 sm:$0xff] }
  0x58   :  { %520 = vmatpush3.bf16.msra.mxu0 %v519_v38 }
  0x59   :  { %502 = vmatpush3.bf16.msra.mxu1 %v501_v20  ;;  %521 = vmatprep.subr.bf16.mxu0 %v652_v0 }
  0x5a   :  { %503 = vmatprep.subr.bf16.mxu1 %v652_v0 }
  0x5c   :  { %523 = vmatpush3.bf16.msra.mxu0 %v522_v41 }
  0x5d   :  { %505 = vmatpush3.bf16.msra.mxu1 %v504_v23  ;;  %524 = vmatprep.subr.bf16.mxu0 %v652_v0 }
  0x5e   :  { %506 = vmatprep.subr.bf16.mxu1 %v652_v0 }
  0x60   :  { %526 = vmatpush3.bf16.msra.mxu0 %v525_v44 }
  0x61   :  { %508 = vmatpush3.bf16.msra.mxu1 %v507_v26  ;;  %527 = vmatprep.subr.bf16.mxu0 %v652_v0 }
  0x62   :  { %509 = vmatprep.subr.bf16.mxu1 %v652_v0 }
  0x64   :  { %529 = vmatpush3.bf16.msra.mxu0 %v528_v47 }
  0x65   :  { %511 = vmatpush3.bf16.msra.mxu1 %v510_v29  ;;  %530 = vmatprep.subr.bf16.mxu0 %v652_v0 }
  0x66   :  { %512 = vmatprep.subr.bf16.mxu1 %v652_v0 }
  0x68   :  { %532 = vmatpush3.bf16.msra.mxu0 %v531_v55 }
  0x69   :  { %514 = vmatpush3.bf16.msra.mxu1 %v513_v32  ;;  %533 = vmatprep.subr.bf16.mxu0 %v652_v0 }
  0x6c   :  { %535 = vmatpush3.bf16.msra.mxu0 %v534_v58 }
  0x6d   :  { %536 = vmatprep.subr.bf16.mxu0 %v652_v0 }
  0x70   :  { %538 = vmatpush3.bf16.msra.mxu0 %v537_v61 }
 0x126   :  { %v161_v49 = vpop.f32.mrb[0].mxu0 }
 0x127   :  { %v162_v50 = vadd.f32 %v361_v48, %v161_v49  ;;  %v414_v51 = vpop.f32.mrb[1].mxu0 }
 0x129   :  { %548 = vtanh.f32 %v162_v50 }
 0x133   :  { %v549_v52 = vpop.eup %548 }
 0x134   :  { %448 = vmatmul.mubr.f32.vlgmr.msra.gmra.mrb[0].mxu1 %v549_v52 }
 0x207   :  { %v255_v63 = vpop.f32.mrb[0].mxu1 }
 0x208   :  { %v256_v1 = vadd.f32 %v363_v62, %v255_v63  ;;  %v449_v2 = vpop.f32.mrb[1].mxu1 }
 0x20a   :  { %550 = vtanh.f32 %v256_v1 }
 0x214   :  { %v551_v3 = vpop.eup %550 }
 0x215   :  { %483 = vmatmul.mubr.f32.vlgmr.msra.gmra.mrb[2].mxu0 %v551_v3 }
 0x2e8   :  { %v349_v5 = vpop.f32.mrb[2].mxu0 }
 0x2e9   :  { %v350_v6 = vadd.f32 %v364_v4, %v349_v5  ;;  %v484_v7 = vpop.f32.mrb[3].mxu0 }
 0x2eb   :  { %353 = vst [vmem:[%s792_s7] sm:$0xff] %v350_v6 }
 0x2ec   :  { %358 = vsyncpa [#allocation3], 1 }
 0x2ed   :  { %359 = vsyncpa [#allocation5], 1 }
 0x2ee   :  { %360 = vsyncpa [#allocation8], 1 }

</bundles_post_ra>
